<compile_context>
chip_gen: v5e
topology: v5e:2x2
jax: 0.10.0
libtpu: 0.0.40
codegen_flags: <defaults>
</compile_context>

<pallas_src>
import functools

import jax
import jax.numpy as jnp
from jax.experimental import pallas as pl
from jax.experimental.pallas import tpu as pltpu


def _gmcap_kernel(x_ref, m_ref, w_ref, c_ref, o_ref):
    # x_ref : (TB, S, E)   input slab
    # m_ref : (TB, S, 1)   mask (1 = keep, 0 = masked), any float dtype
    # w_ref : (E, U)       fused projection W = U + V
    # c_ref : (1, 1, U)    context vector
    # o_ref : (TB, E)      pooled output
    tb, s, e = x_ref.shape
    u = w_ref.shape[1]

    x3 = x_ref[...]                                   # (TB, S, E)

    # Single fused projection on the MXU (W = U + V precomputed in wrapper),
    # f32 accumulation.  S is a multiple of 8 for the module defaults, so the
    # leading-dim merge is copy-free; for ragged S it costs one VMEM copy.
    x2 = x3.reshape(tb * s, e)
    h = jnp.tanh(jnp.dot(x2, w_ref[...],
                         preferred_element_type=jnp.float32))    # (TB*S, U)
    h3 = h.reshape(tb, s, u)                          # (TB, S, U) f32

    # Context scores + additive mask bias, kept in (TB, S, 1) layout
    # (S on sublanes, matching x3) to avoid lane<->sublane relayouts.
    mask_bias = (1.0 - m_ref[...].astype(jnp.float32)) * (-10000.0)  # (TB,S,1)
    scores = jnp.sum(h3 * c_ref[...], axis=-1, keepdims=True) + mask_bias

    # Numerically-stable softmax over the sequence axis (sublanes).
    s_max = jnp.max(scores, axis=1, keepdims=True)    # (TB, 1, 1)
    p = jnp.exp(scores - s_max)
    p = p / jnp.sum(p, axis=1, keepdims=True)         # (TB, S, 1) f32

    # Weighted sum over S: VPU broadcast-multiply + sublane (XLU) reduce.
    # Hides under the projection matmul instead of TB tiny M=1 MXU matvecs.
    out = jnp.sum(p * x3, axis=1)                     # (TB, E) f32
    o_ref[...] = out.astype(o_ref.dtype)


def _choose_block_b(B, S, E, itemsize, target_bytes=2 * 1024 * 1024):
    """Pick a batch tile: ~target_bytes of x per grid step, multiple of 8,
    >= ~4 grid steps when B is large (v7x megacore), full batch when small."""
    per_row = max(1, S * E * itemsize)
    tb = max(8, (target_bytes // per_row) // 8 * 8)
    if B >= 32:
        tb = min(tb, max(8, (B // 4) // 8 * 8))
    if tb >= B:
        return int(B)
    return int(tb)


@functools.partial(jax.jit, static_argnames=("block_b", "compute_dtype"))
def global_mask_context_attention_pooling_1d(x, mask, U, V, c, *,
                                             block_b=None, compute_dtype=None):
    """x: (B, S, E), mask: (B, S) with 1=keep/0=masked, U/V: (E, units), c: (units,).

    block_b: optional explicit batch tile (must be a multiple of 8 or >= B).
    compute_dtype: e.g. jnp.bfloat16 to use bf16 MXU inputs / halve x HBM
                   traffic on v6e/v7x (f32 accumulation is kept).
    """
    B, S, E = x.shape
    units = U.shape[1]
    out_dtype = x.dtype

    # Algebraic fusion of the two projections (exact for the no-bias config).
    W = U.astype(jnp.float32) + V.astype(jnp.float32)          # (E, units)
    c3 = c.reshape(1, 1, units).astype(jnp.float32)            # (1, 1, units)

    if compute_dtype is not None:
        x = x.astype(compute_dtype)
        W = W.astype(compute_dtype)
    itemsize = jnp.dtype(x.dtype).itemsize

    TB = block_b if block_b is not None else _choose_block_b(B, S, E, itemsize)
    TB = min(int(TB), B)

    # Mask stays in its original (tiny) dtype; bias is computed in-kernel.
    # (B, S, 1) keeps S on sublanes so it matches the score layout.
    mask3 = mask.reshape(B, S, 1)

    # VMEM budget hint: double-buffered slabs + resident weights, with headroom.
    est = 2 * (TB * S * E + TB * S + TB * E) * itemsize + (E * units + units) * 4
    vmem_limit = int(min(64 * 1024 * 1024,
                         max(32 * 1024 * 1024, int(est * 1.5))))

    grid = (pl.cdiv(B, TB),)   # no full-tensor pad; ragged last block is fine

    out = pl.pallas_call(
        _gmcap_kernel,
        out_shape=jax.ShapeDtypeStruct((B, E), out_dtype),
        grid=grid,
        in_specs=[
            pl.BlockSpec((TB, S, E), lambda b: (b, 0, 0)),
            pl.BlockSpec((TB, S, 1), lambda b: (b, 0, 0)),
            pl.BlockSpec((E, units), lambda b: (0, 0)),
            pl.BlockSpec((1, 1, units), lambda b: (0, 0, 0)),
        ],
        out_specs=pl.BlockSpec((TB, E), lambda b: (b, 0)),
        compiler_params=pltpu.CompilerParams(
            dimension_semantics=("parallel",),
            vmem_limit_bytes=vmem_limit),
    )(x, mask3, W, c3)

    return out


def _reference(x, mask, U, V, c):
    q = jnp.matmul(x, U)
    k = jnp.matmul(x, V)
    h = jnp.tanh(q + k)
    e = jnp.matmul(h, c)
    e = e + (1.0 - mask) * (-10000.0)
    p = jax.nn.softmax(e, axis=-1)
    return jnp.sum(p[..., None] * x, axis=1)


if __name__ == "__main__":
    # Module config: embed_size=32, units defaults to embed_size,
    # use_additive_bias=False, use_attention_bias=False (defaults).
    E = 32
    units = E

    key = jax.random.PRNGKey(0)
    ku, kv, kc, k0 = jax.random.split(key, 4)

    # trunc_normal_(std=0.01) equivalent, deterministic.
    U = 0.01 * jax.random.truncated_normal(ku, -2.0, 2.0, (E, units), jnp.float32)
    V = 0.01 * jax.random.truncated_normal(kv, -2.0, 2.0, (E, units), jnp.float32)
    c = 0.01 * jax.random.truncated_normal(kc, -2.0, 2.0, (units,), jnp.float32)

    def make_inputs(k, B, S):
        kx, km = jax.random.split(k)
        x = jax.random.normal(kx, (B, S, E), dtype=jnp.float32)
        mask = (jax.random.uniform(km, (B, S)) > 0.3).astype(jnp.float32)
        mask = mask.at[:, 0].set(1.0)     # at least one valid position per row
        return x, mask

    # 1) Module-default small config (B=2, S=8): single full-batch block.
    x, mask = make_inputs(jax.random.fold_in(k0, 1), 2, 8)
    out = jax.block_until_ready(
        global_mask_context_attention_pooling_1d(x, mask, U, V, c))
    ref = _reference(x, mask, U, V, c)
    assert out.shape == (2, E)
    assert jnp.allclose(out, ref, atol=1e-5, rtol=1e-5), (out, ref)

    # 2) Multi-block path with a ragged last tile (B=20, TB=8 -> 3 grid steps,
    #    no wrapper-side padding of x).
    x, mask = make_inputs(jax.random.fold_in(k0, 2), 20, 8)
    out = jax.block_until_ready(
        global_mask_context_attention_pooling_1d(x, mask, U, V, c, block_b=8))
    ref = _reference(x, mask, U, V, c)
    assert out.shape == (20, E)
    assert jnp.allclose(out, ref, atol=1e-5, rtol=1e-5), (out, ref)

    # 3) Optional bf16 compute path (v6e/v7x MXU / HBM optimization).
    x, mask = make_inputs(jax.random.fold_in(k0, 3), 16, 8)
    out = jax.block_until_ready(
        global_mask_context_attention_pooling_1d(
            x, mask, U, V, c, block_b=8, compute_dtype=jnp.bfloat16))
    ref = _reference(x, mask, U, V, c)
    assert out.shape == (16, E)
    assert jnp.allclose(out, ref, atol=3e-2, rtol=3e-2), (out, ref)

    print("KERNEL_OK")
</pallas_src>

<mosaic_0001>
module attributes {stable_mosaic.version = 11 : i64} {
  func.func @_gmcap_kernel(%arg0: i32, %arg1: memref<2x8x32xf32, #tpu.memory_space<vmem>>, %arg2: memref<2x8x1xf32, #tpu.memory_space<vmem>>, %arg3: memref<32x32xf32, #tpu.memory_space<vmem>>, %arg4: memref<1x1x32xf32, #tpu.memory_space<vmem>>, %arg5: memref<2x32xf32, #tpu.memory_space<vmem>>) attributes {dimension_semantics = [#tpu.dimension_semantics<parallel>], iteration_bounds = array<i64: 1>, scalar_prefetch = 0 : i64, scratch_operands = 0 : i64, tpu.core_type = #tpu.core_type<tc>, window_params = [{transform_indices = @transform_0, window_bounds = array<i64: 2, 8, 32>}, {transform_indices = @transform_1, window_bounds = array<i64: 2, 8, 1>}, {pipeline_mode = #tpu.pipeline_mode<synchronous>, transform_indices = @transform_2, window_bounds = array<i64: 32, 32>}, {pipeline_mode = #tpu.pipeline_mode<synchronous>, transform_indices = @transform_3, window_bounds = array<i64: 1, 1, 32>}, {transform_indices = @transform_4, window_bounds = array<i64: 2, 32>}]} {
    %c0 = arith.constant 0 : index
    %c0_0 = arith.constant 0 : index
    %c0_1 = arith.constant 0 : index
    %0 = vector.load %arg1[%c0, %c0_0, %c0_1] : memref<2x8x32xf32, #tpu.memory_space<vmem>>, vector<2x8x32xf32>
    %1 = vector.shape_cast %0 : vector<2x8x32xf32> to vector<16x32xf32>
    %c0_2 = arith.constant 0 : index
    %c0_3 = arith.constant 0 : index
    %2 = vector.load %arg3[%c0_2, %c0_3] : memref<32x32xf32, #tpu.memory_space<vmem>>, vector<32x32xf32>
    %cst = arith.constant dense<0.000000e+00> : vector<16x32xf32>
    %3 = tpu.matmul %1, %2, %cst {dimension_numbers = #tpu.dot_dimension_numbers<[1], [0], [0], [1], [0, 0, 1, 1], [], []>} : vector<16x32xf32>, vector<32x32xf32>, vector<16x32xf32> -> vector<16x32xf32>
    %4 = math.tanh %3 : vector<16x32xf32>
    %5 = vector.shape_cast %4 : vector<16x32xf32> to vector<2x8x32xf32>
    %c0_4 = arith.constant 0 : index
    %c0_5 = arith.constant 0 : index
    %c0_6 = arith.constant 0 : index
    %6 = vector.load %arg2[%c0_4, %c0_5, %c0_6] : memref<2x8x1xf32, #tpu.memory_space<vmem>>, vector<2x8x1xf32>
    %cst_7 = arith.constant 1.000000e+00 : f32
    %7 = vector.broadcast %cst_7 : f32 to vector<2x8x1xf32>
    %8 = arith.subf %7, %6 : vector<2x8x1xf32>
    %cst_8 = arith.constant -1.000000e+04 : f32
    %9 = vector.broadcast %cst_8 : f32 to vector<2x8x1xf32>
    %10 = arith.mulf %8, %9 : vector<2x8x1xf32>
    %c0_9 = arith.constant 0 : index
    %c0_10 = arith.constant 0 : index
    %c0_11 = arith.constant 0 : index
    %11 = vector.load %arg4[%c0_9, %c0_10, %c0_11] : memref<1x1x32xf32, #tpu.memory_space<vmem>>, vector<1x1x32xf32>
    %12 = vector.broadcast %11 : vector<1x1x32xf32> to vector<2x8x32xf32>
    %13 = arith.mulf %5, %12 : vector<2x8x32xf32>
    %cst_12 = arith.constant dense<0.000000e+00> : vector<2x8xf32>
    %14 = vector.multi_reduction <add>, %13, %cst_12 [2] : vector<2x8x32xf32> to vector<2x8xf32>
    %15 = vector.shape_cast %14 : vector<2x8xf32> to vector<2x8x1xf32>
    %16 = arith.addf %15, %10 : vector<2x8x1xf32>
    %cst_13 = arith.constant dense<0xFF800000> : vector<2x1xf32>
    %17 = vector.multi_reduction <maximumf>, %16, %cst_13 [1] : vector<2x8x1xf32> to vector<2x1xf32>
    %18 = vector.shape_cast %17 : vector<2x1xf32> to vector<2x1x1xf32>
    %19 = vector.broadcast %18 : vector<2x1x1xf32> to vector<2x8x1xf32>
    %20 = arith.subf %16, %19 : vector<2x8x1xf32>
    %21 = math.exp %20 : vector<2x8x1xf32>
    %cst_14 = arith.constant dense<0.000000e+00> : vector<2x1xf32>
    %22 = vector.multi_reduction <add>, %21, %cst_14 [1] : vector<2x8x1xf32> to vector<2x1xf32>
    %23 = vector.shape_cast %22 : vector<2x1xf32> to vector<2x1x1xf32>
    %24 = vector.broadcast %23 : vector<2x1x1xf32> to vector<2x8x1xf32>
    %25 = arith.divf %21, %24 : vector<2x8x1xf32>
    %26 = vector.broadcast %25 : vector<2x8x1xf32> to vector<2x8x32xf32>
    %27 = arith.mulf %26, %0 : vector<2x8x32xf32>
    %cst_15 = arith.constant dense<0.000000e+00> : vector<2x32xf32>
    %28 = vector.multi_reduction <add>, %27, %cst_15 [1] : vector<2x8x32xf32> to vector<2x32xf32>
    %c0_16 = arith.constant 0 : index
    %c0_17 = arith.constant 0 : index
    %29 = vector.load %arg5[%c0_16, %c0_17] : memref<2x32xf32, #tpu.memory_space<vmem>>, vector<2x32xf32>
    tpu.vector_store %arg5[%c0_16, %c0_17], %28 {strides = array<i32>} : memref<2x32xf32, #tpu.memory_space<vmem>>, vector<2x32xf32>,
    return
  }
  func.func @transform_0(%arg0: i32) -> (i32, i32, i32) {
    %c0_i32 = arith.constant 0 : i32
    %c0_i32_0 = arith.constant 0 : i32
    %c0_i32_1 = arith.constant 0 : i32
    return %arg0, %c0_i32, %c0_i32_0 : i32, i32, i32
  }
  func.func @transform_1(%arg0: i32) -> (i32, i32, i32) {
    %c0_i32 = arith.constant 0 : i32
    %c0_i32_0 = arith.constant 0 : i32
    %c0_i32_1 = arith.constant 0 : i32
    return %arg0, %c0_i32, %c0_i32_0 : i32, i32, i32
  }
  func.func @transform_2(%arg0: i32) -> (i32, i32) {
    %c0_i32 = arith.constant 0 : i32
    %c0_i32_0 = arith.constant 0 : i32
    %c0_i32_1 = arith.constant 0 : i32
    return %c0_i32, %c0_i32_0 : i32, i32
  }
  func.func @transform_3(%arg0: i32) -> (i32, i32, i32) {
    %c0_i32 = arith.constant 0 : i32
    %c0_i32_0 = arith.constant 0 : i32
    %c0_i32_1 = arith.constant 0 : i32
    %c0_i32_2 = arith.constant 0 : i32
    return %c0_i32, %c0_i32_0, %c0_i32_1 : i32, i32, i32
  }
  func.func @transform_4(%arg0: i32) -> (i32, i32) {
    %c0_i32 = arith.constant 0 : i32
    %c0_i32_0 = arith.constant 0 : i32
    return %arg0, %c0_i32 : i32, i32
  }
}

</mosaic_0001>

<bundles_post_ra>
// kernel: global_mask_context_attention_pooling_1d.1
= control target key start
LH: loop header
LB: loop body
LE: loop exit
PB: predicated region body
PF: predicated region fallthrough
CT: control target
= control target key end

     0   :  { %s314_s0 = inlined_call_operand.vmem [shape: f32[2,8,32], index: 0, kind: input, shape index: {}]   ;;  %s315_s1 = inlined_call_operand.vmem [shape: f32[2,8,1], index: 1, kind: input, shape index: {}]   ;;  %s316_s2 = inlined_call_operand.vmem [shape: f32[32,32], index: 2, kind: input, shape index: {}]   ;;  %s317_s3 = inlined_call_operand.vmem [shape: f32[1,1,32], index: 3, kind: input, shape index: {}]   ;;  %s318_s4 = inlined_call_operand.hbm [shape: f32[2,32], index: 4, kind: output, shape index: {}]  }
   0x1   :  { %v23_v0 = vld [vmem:[%s316_s2 + $0x18] sm:$0xff]  ;;  %v22_v1 = vld [vmem:[%s316_s2 + $0x10] sm:$0xff]  ;;  %v21_v2 = vld [vmem:[%s316_s2 + $0x8] sm:$0xff] }
   0x2   :  { %43 = vmatpush.msra.mxu0 %v23_v0  ;;  %192 = vmatpush.msra.mxu1 %v23_v0 }
   0x3   :  { %9 = vsyncpa [#allocation3], 0  ;;  %v20_v3 = vld [vmem:[%s316_s2] sm:$0xff]  ;;  %vm24_vm0 = vcmask 261120   ;;  %v286_v5 = vld [vmem:[%s314_s0 + $0x8] sm:$0xff]  ;;  %vm76_vm1 = vcmask 7168  }
   0x4   :  { %44 = vmatpush.msra.mxu0 %v22_v1  ;;  %193 = vmatpush.msra.mxu1 %v22_v1  ;;  %v281_v4 = vld [vmem:[%s314_s0] sm:$0xff]  ;;  %v57_v18 = vld [vmem:[%s315_s1 + $0x8] sm:$0xff]  ;;  %v239_v37 = vmov 0   ;;  %s181_s7 = sshll.u32 %s318_s4, 4  ;;  %vm169_vm10 = vcmask 1041409   ;;  %vm172_vm11 = vcmask 254976   ;;  %s182_s7 = int_to_ptr.hbm [resolvable:$true] %s181_s7 }
   0x5   :  { %v200_v8 = vld [vmem:[%s317_s3] ss:$0 sm:$0xff]  ;;  %v59_v21 = vsub.f32 1.0, %v57_v18  ;;  %198 = vset.pattern.permute.xlu1 %v239_v37  ;;  %199 = vset.pattern.permute.xlu0 %v239_v37 }
   0x6   :  { %45 = vmatpush.msra.mxu0 %v21_v2  ;;  %194 = vmatpush.msra.mxu1 %v21_v2  ;;  %v56_v15 = vld [vmem:[%s315_s1] sm:$0xff]  ;;  %s240_s1 = smov [#allocation2]  }
   0x7   :  { %v58_v16 = vsub.f32 1.0, %v56_v15  ;;  %v61_v24 = vmul.f32 -10000.0, %v59_v21  ;;  %s179_s3 = sshll.u32 %s240_s1, 4  ;;  %s180_s3 = int_to_ptr.vmem [resolvable:$true] %s179_s3 }
   0x8   :  { %46 = vmatpush.msra.mxu0 %v20_v3  ;;  %195 = vmatpush.msra.mxu1 %v20_v3 }
   0x9   :  { %190 = vmatmul.msk.f32.vlgmr.msra.gmra.mxu0 %vm24_vm0, %v281_v4  ;;  %191 = vmatmul.msk.f32.vlgmr.msra.gmra.mxu1 %vm24_vm0, %v286_v5  ;;  %v60_v17 = vmul.f32 -10000.0, %v58_v16 }
  0x86   :  { %v48_v6 = vpop.f32.mrf.mxu0  ;;  %v51_v7 = vpop.f32.mrf.mxu1 }
  0x87   :  { %201 = vtanh.f32 %v48_v6 }
  0x88   :  { %203 = vtanh.f32 %v51_v7 }
  0x8d   :  { %v202_v9 = vpop.eup %201 }
  0x8e   :  { %v66_v10 = vmul.f32 %v202_v9, %v200_v8  ;;  %v204_v11 = vpop.eup %203 }
  0x8f   :  { %v67_v13 = vmul.f32 %v204_v11, %v200_v8 }
  0x90   :  { %v68_v12 = vsel %vm24_vm0, %v66_v10, 0.0 }
  0x91   :  { %69 = vadd.xlane.f32.xlu0 %v68_v12  ;;  %v71_v14 = vsel %vm24_vm0, %v67_v13, 0.0 }
  0x99   :  { %72 = vadd.xlane.f32.xlu0 %v71_v14 }
 0x104   :  { %v70_v19 = vpop.xlane.xlu0 %69 }
 0x105   :  { %v74_v20 = vadd.f32 %v70_v19, %v60_v17 }
 0x107   :  { %v77_v22 = vsel %vm76_vm1, %v74_v20, -inf }
 0x108   :  { %v78_v23 = vrot.slane %v77_v22, 4 }
 0x10a   :  { %v79_v25 = vmax.f32 %v77_v22, %v78_v23 }
 0x10c   :  { %v80_v26 = vrot.slane %v79_v25, 2  ;;  %v73_v27 = vpop.xlane.xlu0 %72 }
 0x10d   :  { %v75_v28 = vadd.f32 %v73_v27, %v61_v24 }
 0x10e   :  { %v81_v29 = vmax.f32 %v79_v25, %v80_v26 }
 0x10f   :  { %v84_v30 = vsel %vm76_vm1, %v75_v28, -inf }
 0x110   :  { %v82_v31 = vrot.slane %v81_v29, 1  ;;  %v85_v32 = vrot.slane %v84_v30, 4 }
 0x112   :  { %v83_v33 = vmax.f32 %v81_v29, %v82_v31  ;;  %v86_v34 = vmax.f32 %v84_v30, %v85_v32 }
 0x114   :  { %v91_v35 = vsub.f32 %v74_v20, %v83_v33  ;;  %v87_v36 = vrot.slane %v86_v34, 2 }
 0x116   :  { %v93_v38 = vmul.f32 1.442695, %v91_v35  ;;  %v88_v39 = vmax.f32 %v86_v34, %v87_v36 }
 0x118   :  { %205 = vpow2.f32 %v93_v38  ;;  %v89_v40 = vrot.slane %v88_v39, 1 }
 0x11a   :  { %v90_v41 = vmax.f32 %v88_v39, %v89_v40 }
 0x11c   :  { %v92_v42 = vsub.f32 %v75_v28, %v90_v41 }
 0x11e   :  { %v206_v43 = vpop.eup %205  ;;  %v95_v44 = vmul.f32 1.442695, %v92_v42 }
 0x11f   :  { %v97_v45 = vsel %vm76_vm1, %v206_v43, 0.0 }
 0x120   :  { %v98_v46 = vrot.slane %v97_v45, 4  ;;  %207 = vpow2.f32 %v95_v44 }
 0x122   :  { %v99_v47 = vadd.f32 %v98_v46, %v97_v45 }
 0x124   :  { %v100_v48 = vrot.slane %v99_v47, 2 }
 0x126   :  { %v208_v49 = vpop.eup %207  ;;  %v101_v50 = vadd.f32 %v100_v48, %v99_v47 }
 0x127   :  { %v104_v51 = vsel %vm76_vm1, %v208_v49, 0.0 }
 0x128   :  { %v102_v52 = vrot.slane %v101_v50, 1  ;;  %v105_v53 = vrot.slane %v104_v51, 4 }
 0x12a   :  { %v103_v54 = vadd.f32 %v102_v52, %v101_v50  ;;  %v106_v55 = vadd.f32 %v105_v53, %v104_v51 }
 0x12c   :  { %209 = vrcp.f32 %v103_v54  ;;  %v107_v56 = vrot.slane %v106_v55, 2  ;;  %v122_v63 = vand.u32 2147483648, %v103_v54  ;;  %v120_v1 = vand.u32 2147483647, %v103_v54 }
 0x12d   :  { %vm116_vm3 = vweird.f32 %v103_v54 }
 0x12e   :  { %v108_v57 = vadd.f32 %v107_v56, %v106_v55  ;;  %v123_v6 = vor.u32 1.1754944e-38, %v122_v63  ;;  %vm121_vm5 = vcmp.eq.f32.partialorder %v120_v1, 8.507059e+37 }
 0x130   :  { %v109_v58 = vrot.slane %v108_v57, 1 }
 0x132   :  { %v210_v59 = vpop.eup %209  ;;  %v110_v60 = vadd.f32 %v109_v58, %v108_v57 }
 0x133   :  { %v112_v61 = vmul.f32 %v210_v59, %v103_v54  ;;  %vm117_vm2 = vweird.f32 %v210_v59 }
 0x134   :  { %211 = vrcp.f32 %v110_v60  ;;  %vm118_vm4 = vmor %vm116_vm3, %vm117_vm2  ;;  %v137_v12 = vand.u32 2147483648, %v110_v60  ;;  %v135_v14 = vand.u32 2147483647, %v110_v60  ;;  %vm131_vm7 = vweird.f32 %v110_v60 }
 0x135   :  { %v113_v62 = vsub.f32 1.0, %v112_v61 }
 0x136   :  { %v138_v16 = vor.u32 1.1754944e-38, %v137_v12  ;;  %vm136_vm9 = vcmp.eq.f32.partialorder %v135_v14, 8.507059e+37 }
 0x137   :  { %v114_v0 = vmul.f32 %v210_v59, %v113_v62 }
 0x139   :  { %v115_v2 = vadd.f32 %v210_v59, %v114_v0 }
 0x13a   :  { %v212_v3 = vpop.eup %211 }
 0x13b   :  { %v119_v7 = vsel %vm118_vm4, %v210_v59, %v115_v2  ;;  %v127_v8 = vmul.f32 %v212_v3, %v110_v60  ;;  %vm132_vm6 = vweird.f32 %v212_v3 }
 0x13c   :  { %v124_v9 = vsel %vm121_vm5, %v123_v6, %v119_v7  ;;  %vm133_vm8 = vmor %vm131_vm7, %vm132_vm6 }
 0x13d   :  { %v125_v10 = vmul.f32 %v206_v43, %v124_v9  ;;  %v128_v11 = vsub.f32 1.0, %v127_v8 }
 0x13f   :  { %143 = vperm.xlu1 %198, %v125_v10   ;;  %v129_v13 = vmul.f32 %v212_v3, %v128_v11 }
 0x141   :  { %v130_v15 = vadd.f32 %v212_v3, %v129_v13 }
 0x143   :  { %v134_v17 = vsel %vm133_vm8, %v212_v3, %v130_v15 }
 0x144   :  { %v139_v18 = vsel %vm136_vm9, %v138_v16, %v134_v17 }
 0x145   :  { %v140_v19 = vmul.f32 %v208_v49, %v139_v18 }
 0x147   :  { %148 = vperm.xlu1 %198, %v140_v19  }
 0x1b1   :  { %v144_v20 = vpop.permute.xlu1 %143 }
 0x1b2   :  { %v151_v21 = vmul.f32 %v144_v20, %v281_v4 }
 0x1b4   :  { %v153_v22 = vsel %vm24_vm0, %v151_v21, 0.0 }
 0x1b5   :  { %v154_v23 = vrot.slane %v153_v22, 4 }
 0x1b7   :  { %v155_v24 = vadd.f32 %v154_v23, %v153_v22 }
 0x1b9   :  { %v149_v25 = vpop.permute.xlu1 %148  ;;  %v156_v27 = vrot.slane %v155_v24, 2 }
 0x1ba   :  { %v152_v26 = vmul.f32 %v149_v25, %v286_v5 }
 0x1bb   :  { %v157_v30 = vadd.f32 %v156_v27, %v155_v24 }
 0x1bc   :  { %v160_v28 = vsel %vm24_vm0, %v152_v26, 0.0 }
 0x1bd   :  { %v161_v29 = vrot.slane %v160_v28, 4  ;;  %v158_v33 = vrot.slane %v157_v30, 1 }
 0x1bf   :  { %v162_v31 = vadd.f32 %v161_v29, %v160_v28  ;;  %v159_v4 = vadd.f32 %v158_v33, %v157_v30 }
 0x1c1   :  { %v163_v32 = vrot.slane %v162_v31, 2 }
 0x1c3   :  { %v164_v34 = vadd.f32 %v163_v32, %v162_v31 }
 0x1c5   :  { %v165_v35 = vrot.slane %v164_v34, 1 }
 0x1c7   :  { %v166_v36 = vadd.f32 %v165_v35, %v164_v34 }
 0x1c9   :  { %v170_v5 = vsel %vm169_vm10, %v166_v36, %v159_v4 }
 0x1ca   :  { %173 = vst.msk [vmem:[#allocation2] sm:$0x3] %vm172_vm11, %v170_v5 }
 0x1cb   :  { %184 = dma.vmem_to_hbm [thread:$0]  %s180_s3, 32, %s182_s7, [#allocation3]  }
 0x1cc   :  { %237 = dma.done.wait [#allocation3], 32  }
 0x1cd   :  { %238 = vsyncadd [#allocation3], 4294967264 }
 0x1ce   :  { %189 = vsyncpa [#allocation3], 1 }

</bundles_post_ra>
